<compile_context>
chip_gen: v6e
topology: v6e:2x2x1
jax: 0.10.0
libtpu: 0.0.40
codegen_flags: <defaults>
</compile_context>

<pallas_src>
import math
from functools import partial

import jax
import jax.numpy as jnp
from jax import lax
from jax.experimental import pallas as pl
from jax.experimental.pallas import tpu as pltpu

_LANES = 128


def _round_up(x, m):
    return (x + m - 1) // m * m


def _lcm(a, b):
    return a * b // math.gcd(a, b)


def _default_exp_dtype():
    """bf16 exponentials only where the EUP supports bf16 (v6e / v7x)."""
    try:
        kind = jax.devices()[0].device_kind.lower()
    except Exception:
        return jnp.float32
    if ("v6" in kind) or ("v7" in kind) or ("tpu7" in kind):
        return jnp.bfloat16
    return jnp.float32


# --------------------------------------------------------------------------- #
# Prologue: fused Q/K/V projection (Q pre-scaled by head_size**-0.5)
# --------------------------------------------------------------------------- #
def _qkv_proj_kernel(x_ref, wq_ref, bq_ref, wk_ref, bk_ref, wv_ref, bv_ref,
                     q_ref, k_ref, v_ref, *, scale):
    x = x_ref[0]                                             # (tp, C) bf16
    # Three separate dots keep the live f32 intermediate to one (tp, HP) tile.
    q = jnp.dot(x, wq_ref[...], preferred_element_type=jnp.float32) + bq_ref[...]
    q_ref[0] = (q * scale).astype(q_ref.dtype)               # fold softmax scale
    k = jnp.dot(x, wk_ref[...], preferred_element_type=jnp.float32) + bk_ref[...]
    k_ref[0] = k.astype(k_ref.dtype)
    v = jnp.dot(x, wv_ref[...], preferred_element_type=jnp.float32) + bv_ref[...]
    v_ref[0] = v.astype(v_ref.dtype)


# --------------------------------------------------------------------------- #
# Flash attention over precomputed Q/K/V
# --------------------------------------------------------------------------- #
def _flash_kernel(q_ref, k_ref, v_ref, o_ref, m_sc, l_sc, acc_sc, *,
                  causal, tq, tk, hp, t_valid, has_tail, exp_dtype):
    qi = pl.program_id(1)
    ki = pl.program_id(2)
    nk = pl.num_programs(2)
    q_start = qi * tq
    kv_start = ki * tk

    @pl.when(ki == 0)
    def _init():
        m_sc[...] = jnp.full_like(m_sc, -jnp.inf)
        l_sc[...] = jnp.zeros_like(l_sc)
        acc_sc[...] = jnp.zeros_like(acc_sc)

    def _attend(use_causal_mask, use_len_mask):
        # Scores: contract the head dims of q and k directly (no k.T transpose).
        s = lax.dot_general(q_ref[0], k_ref[0],
                            dimension_numbers=(((1,), (1,)), ((), ())),
                            preferred_element_type=jnp.float32)   # (tq, tk)

        if use_causal_mask or use_len_mask:
            col = kv_start + lax.broadcasted_iota(jnp.int32, (tq, tk), 1)
            mask = None
            if use_causal_mask:
                row = q_start + lax.broadcasted_iota(jnp.int32, (tq, tk), 0)
                mask = row >= col
            if use_len_mask:
                lm = col < t_valid
                mask = lm if mask is None else jnp.logical_and(mask, lm)
            s = jnp.where(mask, s, -1e30)        # finite mask: no NaN hazard

        m_prev = m_sc[...]                                    # (tq, 128) replicated
        s_max = jnp.max(s, axis=-1, keepdims=True)            # (tq, 1)
        m_new = jnp.maximum(m_prev, s_max)                    # (tq, 128) replicated
        alpha = jnp.exp(m_prev - m_new)                       # (tq, 128) f32
        p = jnp.exp((s - m_new[:, :1]).astype(exp_dtype))     # bf16 on v6e/v7x
        p_sum = jnp.sum(p.astype(jnp.float32), axis=-1, keepdims=True)  # f32 acc

        a_acc = alpha if hp == _LANES else alpha[:, :1]
        l_sc[...] = alpha * l_sc[...] + p_sum
        acc_sc[...] = a_acc * acc_sc[...] + jnp.dot(
            p.astype(jnp.bfloat16), v_ref[0], preferred_element_type=jnp.float32)
        m_sc[...] = m_new

    is_tail = (kv_start + tk > t_valid) if has_tail else None

    if causal:
        attended = kv_start <= q_start + (tq - 1)             # not fully masked
        needs_mask = kv_start + (tk - 1) > q_start            # straddles diagonal
        if has_tail:
            needs_mask = jnp.logical_or(needs_mask, is_tail)
        pl.when(jnp.logical_and(attended, jnp.logical_not(needs_mask)))(
            lambda: _attend(False, False))                    # mask-free fast path
        pl.when(jnp.logical_and(attended, needs_mask))(
            lambda: _attend(True, has_tail))
        last_needed = jnp.minimum(nk - 1, (q_start + tq - 1) // tk)
    else:
        if has_tail:
            pl.when(jnp.logical_not(is_tail))(lambda: _attend(False, False))
            pl.when(is_tail)(lambda: _attend(False, True))
        else:
            _attend(False, False)
        last_needed = nk - 1

    @pl.when(ki == last_needed)
    def _finalize():
        inv_l = pl.reciprocal(l_sc[...], approx=True)         # EUP slot, ~free
        i_acc = inv_l if hp == _LANES else inv_l[:, :1]
        o_ref[0] = (acc_sc[...] * i_acc).astype(o_ref.dtype)


# --------------------------------------------------------------------------- #
# Host wrapper
# --------------------------------------------------------------------------- #
def head_forward(x, wq, bq, wk, bk, wv, bv, *, causal=False, tq=256, tk=256,
                 proj_tile=256, exp_dtype=None, out_dtype=None):
    """x: (B, T, C); w*: (C, H); b*: (H,).  Returns (B, T, H)."""
    B, T, C = x.shape
    H = wq.shape[1]
    HP = _round_up(H, _LANES)                   # lane-dense (padded) head dim
    out_dtype = x.dtype if out_dtype is None else out_dtype
    exp_dtype = _default_exp_dtype() if exp_dtype is None else exp_dtype

    # Snap tiles to multiples of 128 and to the (padded) sequence length.
    tq = max(128, min(_round_up(tq, 128), _round_up(T, 128)))
    tk = max(128, min(_round_up(tk, 128), _round_up(T, 128)))
    tp = max(128, min(_round_up(proj_tile, 128), _round_up(T, 128)))
    Tp = _round_up(T, _lcm(_lcm(tq, tk), tp))   # padded sequence length
    has_tail = Tp != T

    def pad_w(w):                                # (C, H) -> (C, HP) bf16
        return jnp.pad(w, ((0, 0), (0, HP - H))).astype(jnp.bfloat16)

    def pad_b(b):                                # (H,) -> (1, HP) f32
        return jnp.pad(b, (0, HP - H)).reshape(1, HP).astype(jnp.float32)

    x_bf = x.astype(jnp.bfloat16)
    if has_tail:
        x_bf = jnp.pad(x_bf, ((0, 0), (0, Tp - T), (0, 0)))

    # ---- 1) projection prologue: Q (scaled), K, V in bf16, HP lanes ----
    q, k, v = pl.pallas_call(
        partial(_qkv_proj_kernel, scale=H ** -0.5),
        out_shape=[jax.ShapeDtypeStruct((B, Tp, HP), jnp.bfloat16)] * 3,
        grid_spec=pltpu.PrefetchScalarGridSpec(
            num_scalar_prefetch=0,
            grid=(B, Tp // tp),
            in_specs=[
                pl.BlockSpec((1, tp, C), lambda b, i: (b, i, 0)),
                pl.BlockSpec((C, HP), lambda b, i: (0, 0)),
                pl.BlockSpec((1, HP), lambda b, i: (0, 0)),
                pl.BlockSpec((C, HP), lambda b, i: (0, 0)),
                pl.BlockSpec((1, HP), lambda b, i: (0, 0)),
                pl.BlockSpec((C, HP), lambda b, i: (0, 0)),
                pl.BlockSpec((1, HP), lambda b, i: (0, 0)),
            ],
            out_specs=[pl.BlockSpec((1, tp, HP), lambda b, i: (b, i, 0))] * 3),
        compiler_params=pltpu.CompilerParams(
            dimension_semantics=("parallel", "parallel")),
    )(x_bf, pad_w(wq), pad_b(bq), pad_w(wk), pad_b(bk), pad_w(wv), pad_b(bv))

    # ---- 2) flash attention over precomputed Q/K/V ----
    if causal:
        # Clamp skipped above-diagonal kv tiles to the last needed block so the
        # pipeline does not issue wasted DMAs for fully-masked steps.
        kv_map = lambda b, qi, ki: (b, jnp.minimum(ki, (qi * tq + tq - 1) // tk), 0)
    else:
        kv_map = lambda b, qi, ki: (b, ki, 0)

    kernel = partial(_flash_kernel, causal=causal, tq=tq, tk=tk, hp=HP,
                     t_valid=T, has_tail=has_tail, exp_dtype=exp_dtype)

    out_padded = pl.pallas_call(
        kernel,
        out_shape=jax.ShapeDtypeStruct((B, Tp, HP), out_dtype),
        grid_spec=pltpu.PrefetchScalarGridSpec(
            num_scalar_prefetch=0,
            grid=(B, Tp // tq, Tp // tk),
            in_specs=[
                pl.BlockSpec((1, tq, HP), lambda b, qi, ki: (b, qi, 0)),  # Q tile
                pl.BlockSpec((1, tk, HP), kv_map),                        # K tile
                pl.BlockSpec((1, tk, HP), kv_map),                        # V tile
            ],
            out_specs=pl.BlockSpec((1, tq, HP), lambda b, qi, ki: (b, qi, 0)),
            scratch_shapes=[
                pltpu.VMEM((tq, _LANES), jnp.float32),   # running max m (replicated)
                pltpu.VMEM((tq, _LANES), jnp.float32),   # running sum l (replicated)
                pltpu.VMEM((tq, HP), jnp.float32),       # output accumulator
            ]),
        compiler_params=pltpu.CompilerParams(
            dimension_semantics=("parallel", "parallel", "arbitrary")),
    )(q, k, v)

    return out_padded[:, :T, :H]


def head_reference(x, wq, bq, wk, bk, wv, bv, *, causal=False):
    """Pure-JAX f32 reference mirroring the PyTorch forward (eval mode)."""
    q = x @ wq + bq
    k = x @ wk + bk
    v = x @ wv + bv
    H = q.shape[-1]
    wei = jnp.einsum("btd,bsd->bts", q, k) * (H ** -0.5)
    if causal:
        T = x.shape[1]
        mask = jnp.tril(jnp.ones((T, T), dtype=bool))
        wei = jnp.where(mask, wei, -jnp.inf)
    wei = jax.nn.softmax(wei, axis=-1)
    return wei @ v


if __name__ == "__main__":
    # Small config consistent with the module (n_embd-style C, head_size H = 64
    # as in n_embd/n_head).  T = 512 exercises the clean multi-tile flash loop
    # and the causal tile-skip; T = 320 exercises sequence padding + tail mask.
    B, C, H = 2, 128, 64

    key = jax.random.PRNGKey(0)
    kx, kwq, kbq, kwk, kbk, kwv, kbv = jax.random.split(key, 7)

    bound = 1.0 / math.sqrt(C)
    wq = jax.random.uniform(kwq, (C, H), jnp.float32, -bound, bound)
    bq = jax.random.uniform(kbq, (H,), jnp.float32, -bound, bound)
    wk = jax.random.uniform(kwk, (C, H), jnp.float32, -bound, bound)
    bk = jax.random.uniform(kbk, (H,), jnp.float32, -bound, bound)
    wv = jax.random.uniform(kwv, (C, H), jnp.float32, -bound, bound)
    bv = jax.random.uniform(kbv, (H,), jnp.float32, -bound, bound)

    ok = True
    for T in (512, 320):
        x = jax.random.normal(jax.random.fold_in(kx, T), (B, T, C),
                              dtype=jnp.float32)
        for causal in (False, True):
            out = head_forward(x, wq, bq, wk, bk, wv, bv, causal=causal)
            out = jax.block_until_ready(out)
            ref = head_reference(x, wq, bq, wk, bk, wv, bv, causal=causal)
            err = float(jnp.max(jnp.abs(out - ref)))
            # bf16 MXU matmuls + bf16 exp (v6e/v7x) + approx reciprocal
            # => modest tolerance vs the f32 reference.
            if not bool(jnp.allclose(out, ref, atol=3e-2, rtol=3e-2)):
                ok = False
                print(f"MISMATCH (T={T}, causal={causal}): max abs err {err}")

    if ok:
        print("KERNEL_OK")
</pallas_src>

<mosaic_0001>
module attributes {stable_mosaic.version = 11 : i64} {
  func.func @_qkv_proj_kernel(%arg0: i32, %arg1: i32, %arg2: memref<1x256x128xbf16, #tpu.memory_space<vmem>>, %arg3: memref<128x128xbf16, #tpu.memory_space<vmem>>, %arg4: memref<1x128xf32, #tpu.memory_space<vmem>>, %arg5: memref<128x128xbf16, #tpu.memory_space<vmem>>, %arg6: memref<1x128xf32, #tpu.memory_space<vmem>>, %arg7: memref<128x128xbf16, #tpu.memory_space<vmem>>, %arg8: memref<1x128xf32, #tpu.memory_space<vmem>>, %arg9: memref<1x256x128xbf16, #tpu.memory_space<vmem>>, %arg10: memref<1x256x128xbf16, #tpu.memory_space<vmem>>, %arg11: memref<1x256x128xbf16, #tpu.memory_space<vmem>>) attributes {dimension_semantics = [#tpu.dimension_semantics<parallel>, #tpu.dimension_semantics<parallel>], iteration_bounds = array<i64: 2, 2>, scalar_prefetch = 0 : i64, scratch_operands = 0 : i64, tpu.core_type = #tpu.core_type<tc>, window_params = [{transform_indices = @transform_0, window_bounds = array<i64: 1, 256, 128>}, {pipeline_mode = #tpu.pipeline_mode<synchronous>, transform_indices = @transform_1, window_bounds = array<i64: 128, 128>}, {pipeline_mode = #tpu.pipeline_mode<synchronous>, transform_indices = @transform_2, window_bounds = array<i64: 1, 128>}, {pipeline_mode = #tpu.pipeline_mode<synchronous>, transform_indices = @transform_3, window_bounds = array<i64: 128, 128>}, {pipeline_mode = #tpu.pipeline_mode<synchronous>, transform_indices = @transform_4, window_bounds = array<i64: 1, 128>}, {pipeline_mode = #tpu.pipeline_mode<synchronous>, transform_indices = @transform_5, window_bounds = array<i64: 128, 128>}, {pipeline_mode = #tpu.pipeline_mode<synchronous>, transform_indices = @transform_6, window_bounds = array<i64: 1, 128>}, {transform_indices = @transform_7, window_bounds = array<i64: 1, 256, 128>}, {transform_indices = @transform_8, window_bounds = array<i64: 1, 256, 128>}, {transform_indices = @transform_9, window_bounds = array<i64: 1, 256, 128>}]} {
    %c0 = arith.constant 0 : index
    %c0_0 = arith.constant 0 : index
    %c0_1 = arith.constant 0 : index
    %0 = vector.load %arg2[%c0, %c0_0, %c0_1] : memref<1x256x128xbf16, #tpu.memory_space<vmem>>, vector<1x256x128xbf16>
    %1 = vector.shape_cast %0 : vector<1x256x128xbf16> to vector<256x128xbf16>
    %c0_2 = arith.constant 0 : index
    %c0_3 = arith.constant 0 : index
    %2 = vector.load %arg3[%c0_2, %c0_3] : memref<128x128xbf16, #tpu.memory_space<vmem>>, vector<128x128xbf16>
    %cst = arith.constant dense<0.000000e+00> : vector<256x128xf32>
    %3 = tpu.matmul %1, %2, %cst {dimension_numbers = #tpu.dot_dimension_numbers<[1], [0], [0], [1], [0, 0, 1, 1], [], []>} : vector<256x128xbf16>, vector<128x128xbf16>, vector<256x128xf32> -> vector<256x128xf32>
    %c0_4 = arith.constant 0 : index
    %c0_5 = arith.constant 0 : index
    %4 = vector.load %arg4[%c0_4, %c0_5] : memref<1x128xf32, #tpu.memory_space<vmem>>, vector<1x128xf32>
    %5 = vector.broadcast %4 : vector<1x128xf32> to vector<256x128xf32>
    %6 = arith.addf %3, %5 : vector<256x128xf32>
    %cst_6 = arith.constant 1.250000e-01 : f32
    %7 = vector.broadcast %cst_6 : f32 to vector<256x128xf32>
    %8 = arith.mulf %6, %7 : vector<256x128xf32>
    %9 = arith.truncf %8 : vector<256x128xf32> to vector<256x128xbf16>
    %c0_7 = arith.constant 0 : index
    %c0_8 = arith.constant 0 : index
    %c0_9 = arith.constant 0 : index
    %10 = vector.load %arg9[%c0_7, %c0_8, %c0_9] : memref<1x256x128xbf16, #tpu.memory_space<vmem>>, vector<1x256x128xbf16>
    %11 = vector.shape_cast %10 : vector<1x256x128xbf16> to vector<256x128xbf16>
    %12 = vector.shape_cast %9 : vector<256x128xbf16> to vector<1x256x128xbf16>
    tpu.vector_store %arg9[%c0_7, %c0_8, %c0_9], %12 {strides = array<i32>} : memref<1x256x128xbf16, #tpu.memory_space<vmem>>, vector<1x256x128xbf16>,
    %c0_10 = arith.constant 0 : index
    %c0_11 = arith.constant 0 : index
    %13 = vector.load %arg5[%c0_10, %c0_11] : memref<128x128xbf16, #tpu.memory_space<vmem>>, vector<128x128xbf16>
    %cst_12 = arith.constant dense<0.000000e+00> : vector<256x128xf32>
    %14 = tpu.matmul %1, %13, %cst_12 {dimension_numbers = #tpu.dot_dimension_numbers<[1], [0], [0], [1], [0, 0, 1, 1], [], []>} : vector<256x128xbf16>, vector<128x128xbf16>, vector<256x128xf32> -> vector<256x128xf32>
    %c0_13 = arith.constant 0 : index
    %c0_14 = arith.constant 0 : index
    %15 = vector.load %arg6[%c0_13, %c0_14] : memref<1x128xf32, #tpu.memory_space<vmem>>, vector<1x128xf32>
    %16 = vector.broadcast %15 : vector<1x128xf32> to vector<256x128xf32>
    %17 = arith.addf %14, %16 : vector<256x128xf32>
    %18 = arith.truncf %17 : vector<256x128xf32> to vector<256x128xbf16>
    %c0_15 = arith.constant 0 : index
    %c0_16 = arith.constant 0 : index
    %c0_17 = arith.constant 0 : index
    %19 = vector.load %arg10[%c0_15, %c0_16, %c0_17] : memref<1x256x128xbf16, #tpu.memory_space<vmem>>, vector<1x256x128xbf16>
    %20 = vector.shape_cast %19 : vector<1x256x128xbf16> to vector<256x128xbf16>
    %21 = vector.shape_cast %18 : vector<256x128xbf16> to vector<1x256x128xbf16>
    tpu.vector_store %arg10[%c0_15, %c0_16, %c0_17], %21 {strides = array<i32>} : memref<1x256x128xbf16, #tpu.memory_space<vmem>>, vector<1x256x128xbf16>,
    %c0_18 = arith.constant 0 : index
    %c0_19 = arith.constant 0 : index
    %22 = vector.load %arg7[%c0_18, %c0_19] : memref<128x128xbf16, #tpu.memory_space<vmem>>, vector<128x128xbf16>
    %cst_20 = arith.constant dense<0.000000e+00> : vector<256x128xf32>
    %23 = tpu.matmul %1, %22, %cst_20 {dimension_numbers = #tpu.dot_dimension_numbers<[1], [0], [0], [1], [0, 0, 1, 1], [], []>} : vector<256x128xbf16>, vector<128x128xbf16>, vector<256x128xf32> -> vector<256x128xf32>
    %c0_21 = arith.constant 0 : index
    %c0_22 = arith.constant 0 : index
    %24 = vector.load %arg8[%c0_21, %c0_22] : memref<1x128xf32, #tpu.memory_space<vmem>>, vector<1x128xf32>
    %25 = vector.broadcast %24 : vector<1x128xf32> to vector<256x128xf32>
    %26 = arith.addf %23, %25 : vector<256x128xf32>
    %27 = arith.truncf %26 : vector<256x128xf32> to vector<256x128xbf16>
    %c0_23 = arith.constant 0 : index
    %c0_24 = arith.constant 0 : index
    %c0_25 = arith.constant 0 : index
    %28 = vector.load %arg11[%c0_23, %c0_24, %c0_25] : memref<1x256x128xbf16, #tpu.memory_space<vmem>>, vector<1x256x128xbf16>
    %29 = vector.shape_cast %28 : vector<1x256x128xbf16> to vector<256x128xbf16>
    %30 = vector.shape_cast %27 : vector<256x128xbf16> to vector<1x256x128xbf16>
    tpu.vector_store %arg11[%c0_23, %c0_24, %c0_25], %30 {strides = array<i32>} : memref<1x256x128xbf16, #tpu.memory_space<vmem>>, vector<1x256x128xbf16>,
    return
  }
  func.func @transform_0(%arg0: i32, %arg1: i32) -> (i32, i32, i32) {
    %c0_i32 = arith.constant 0 : i32
    %c0_i32_0 = arith.constant 0 : i32
    return %arg0, %arg1, %c0_i32 : i32, i32, i32
  }
  func.func @transform_1(%arg0: i32, %arg1: i32) -> (i32, i32) {
    %c0_i32 = arith.constant 0 : i32
    %c0_i32_0 = arith.constant 0 : i32
    %c0_i32_1 = arith.constant 0 : i32
    return %c0_i32, %c0_i32_0 : i32, i32
  }
  func.func @transform_2(%arg0: i32, %arg1: i32) -> (i32, i32) {
    %c0_i32 = arith.constant 0 : i32
    %c0_i32_0 = arith.constant 0 : i32
    %c0_i32_1 = arith.constant 0 : i32
    return %c0_i32, %c0_i32_0 : i32, i32
  }
  func.func @transform_3(%arg0: i32, %arg1: i32) -> (i32, i32) {
    %c0_i32 = arith.constant 0 : i32
    %c0_i32_0 = arith.constant 0 : i32
    %c0_i32_1 = arith.constant 0 : i32
    return %c0_i32, %c0_i32_0 : i32, i32
  }
  func.func @transform_4(%arg0: i32, %arg1: i32) -> (i32, i32) {
    %c0_i32 = arith.constant 0 : i32
    %c0_i32_0 = arith.constant 0 : i32
    %c0_i32_1 = arith.constant 0 : i32
    return %c0_i32, %c0_i32_0 : i32, i32
  }
  func.func @transform_5(%arg0: i32, %arg1: i32) -> (i32, i32) {
    %c0_i32 = arith.constant 0 : i32
    %c0_i32_0 = arith.constant 0 : i32
    %c0_i32_1 = arith.constant 0 : i32
    return %c0_i32, %c0_i32_0 : i32, i32
  }
  func.func @transform_6(%arg0: i32, %arg1: i32) -> (i32, i32) {
    %c0_i32 = arith.constant 0 : i32
    %c0_i32_0 = arith.constant 0 : i32
    %c0_i32_1 = arith.constant 0 : i32
    return %c0_i32, %c0_i32_0 : i32, i32
  }
  func.func @transform_7(%arg0: i32, %arg1: i32) -> (i32, i32, i32) {
    %c0_i32 = arith.constant 0 : i32
    %c0_i32_0 = arith.constant 0 : i32
    return %arg0, %arg1, %c0_i32 : i32, i32, i32
  }
  func.func @transform_8(%arg0: i32, %arg1: i32) -> (i32, i32, i32) {
    %c0_i32 = arith.constant 0 : i32
    %c0_i32_0 = arith.constant 0 : i32
    return %arg0, %arg1, %c0_i32 : i32, i32, i32
  }
  func.func @transform_9(%arg0: i32, %arg1: i32) -> (i32, i32, i32) {
    %c0_i32 = arith.constant 0 : i32
    %c0_i32_0 = arith.constant 0 : i32
    return %arg0, %arg1, %c0_i32 : i32, i32, i32
  }
}

</mosaic_0001>

<bundles_post_ra>
// kernel: tpu_custom_call.1
= control target key start
LH: loop header
LB: loop body
LE: loop exit
PB: predicated region body
PF: predicated region fallthrough
CT: control target
= control target key end

     0   :  { %s3846_s0 = inlined_call_operand.hbm [shape: bf16[2,512,128], index: 0, kind: input, shape index: {}]   ;;  %s3847_s1 = inlined_call_operand.hbm [shape: bf16[128,128], index: 1, kind: input, shape index: {}]   ;;  %s3848_s2 = inlined_call_operand.vmem [shape: f32[1,128], index: 2, kind: input, shape index: {}]   ;;  %s3849_s3 = inlined_call_operand.hbm [shape: bf16[128,128], index: 3, kind: input, shape index: {}]   ;;  %s3850_s4 = inlined_call_operand.vmem [shape: f32[1,128], index: 4, kind: input, shape index: {}]   ;;  %s3851_s5 = inlined_call_operand.hbm [shape: bf16[128,128], index: 5, kind: input, shape index: {}]   ;;  %s3852_s6 = inlined_call_operand.vmem [shape: f32[1,128], index: 6, kind: input, shape index: {}]   ;;  %s3853_s7 = inlined_call_operand.hbm [shape: bf16[2,512,128], index: 7, kind: output, shape index: {0}]   ;;  %s3854_s8 = inlined_call_operand.hbm [shape: bf16[2,512,128], index: 8, kind: output, shape index: {1}]   ;;  %s3855_s9 = inlined_call_operand.hbm [shape: bf16[2,512,128], index: 9, kind: output, shape index: {2}]  }
   0x1   :  { %3869 = sst [smem:[#allocation24_spill]] %s3847_s1 }
   0x2   :  { %3870 = sst [smem:[#allocation25_spill]] %s3849_s3 }
   0x3   :  { %3871 = sst [smem:[#allocation26_spill]] %s3851_s5 }
   0x4   :  { %3872 = sst [smem:[#allocation27_spill]] %s3853_s7 }
   0x5   :  { %3873 = sst [smem:[#allocation28_spill]] %s3854_s8 }
   0x6   :  { %3874 = sst [smem:[#allocation29_spill]] %s3855_s9 }
   0x7   :  { %15 = vsyncpa [#allocation3], 0 }
   0x8   :  { %17 = vsyncpa [#allocation3 + $0x1], 0 }
   0x9   :  { %18 = vsyncpa [#allocation6], 0 }
   0xa   :  { %19 = vsyncpa [#allocation9], 0 }
   0xb   :  { %20 = vsyncpa [#allocation4], 0 }
   0xc   :  { %22 = vsyncpa [#allocation4 + $0x1], 0 }
   0xd   :  { %23 = vsyncpa [#allocation12], 0 }
   0xe   :  { %25 = vsyncpa [#allocation12 + $0x1], 0  ;;  %s3301_s30 = smov 0   ;;  %s3303_s10 = smov 0  }
   0xf   :  { %s3305_s11 = smov 0   ;;  %s3307_s12 = smov 0  }
  0x10   :  { %s3309_s13 = smov 0   ;;  %s3311_s14 = smov 0  }
  0x11   :  { %s3313_s15 = smov 0   ;;  %s3315_s16 = smov 0  }
  0x12 LB: > { %3875 = sst [smem:[#allocation19_spill]] %s3210_s30  ;;  %s3342_s17 = sadd.s32 4294967295, %s3238_s16   ;;  %s3238_s16 = sphi %s3315_s16, %s31_s16   ;;  %s3234_s15 = sphi %s3313_s15, %s3909_s15   ;;  %s3230_s14 = sphi %s3311_s14, %s3904_s14   ;;  %s3226_s13 = sphi %s3309_s13, %s3908_s13   ;;  %s3222_s12 = sphi %s3307_s12, %s3903_s12   ;;  %s3218_s11 = sphi %s3305_s11, %s3907_s11   ;;  %s3214_s10 = sphi %s3303_s10, %s3906_s10   ;;  %s3210_s30 = sphi %s3301_s30, %s3905_s30  }
  0x13   : > { %3876 = sst [smem:[#allocation20_spill]] %s3230_s14  ;;  %s3856_s18 = sadd.s32 4294967294, %s3238_s16  }
  0x14   : > { %p65_p0 = scmp.ne.s32.totalorder %s3214_s10, %s3210_s30  ;;  %p3859_p1 = scmp.eq.s32.totalorder %s3342_s17, 0 }
  0x15   : > { %p217_p2 = scmp.eq.s32.totalorder %s3342_s17, 3  ;;  %p223_p3 = scmp.eq.s32.totalorder %s3856_s18, 3 }
  0x16   : > { %p3353_p4 = por %p3859_p1, %p65_p0  ;;  %p2026_p5 = scmp.ge.s32.totalorder %s3238_s16, 1 }
  0x17   : > { %p3358_p6 = por %p223_p3, %p65_p0  ;;  %p286_p7 = scmp.lt.s32.totalorder %s3238_s16, 5 }
  0x18   : > { %s3240_s22 = smov [#allocation5]   ;;  %s3241_s25 = smov [#allocation7]  }
  0x19   : > { %s3878_s20 = scalar_select %p3358_p6, 1, 0 }
  0x1a   : > { %p3363_p8 = pnand %p2026_p5, %p286_p7  ;;  %s298_s23 = sshll.u32 %s3240_s22, 4  ;;  %s299_s23 = int_to_ptr.vmem [resolvable:$true] %s298_s23 }
  0x1b   : > { %3879 = sst [smem:[#allocation21_spill]] %s3878_s20  ;;  %s314_s26 = sshll.u32 %s3241_s25, 4  ;;  %s315_s26 = int_to_ptr.vmem [resolvable:$true] %s314_s26 }
  0x1c   : > { %p2829_p9 = pneg %p3363_p8  ;;  %s3242_s27 = smov [#allocation8]  }
  0x1d   : > { %s330_s28 = sshll.u32 %s3242_s27, 4  ;;  %s2983_s29 = scalar_lea.vmem %s299_s23, 1024  ;;  %s331_s28 = int_to_ptr.vmem [resolvable:$true] %s330_s28 }
  0x1e   : > { %p3371_p10 = pnand %p2829_p9, %p3859_p1  ;;  %p2984_p12 = scmp.ne.s32.totalorder %s299_s23, %s2983_s29 }
  0x1f   : > { %p2991_p3 = scmp.lt.s32.totalorder %s299_s23, %s299_s23  ;;  %p2992_p5 = scmp.lt.s32.totalorder %s2983_s29, %s2983_s29 }
  0x20   : > { %p2974_p11 = pneg %p3371_p10 }
  0x21   : > { %p2993_p7 = por %p2992_p5, %p2991_p3 }
  0x22   : > { %p2986_p13 = pnand %p2984_p12, %p2974_p11 }
  0x24   : > { %p2987_p0 = pneg %p2986_p13 }
  0x26   : > { %p2994_p9 = pnand %p2993_p7, %p2987_p0 }
  0x28   : > { %2997 = shalt.err (!%p2994_p9)
}
  0x29   : > { %s3860_s22 = smov 64   ;;  %s3861_s25 = smov 4  }
  0x2a   : > { %s3882_s1 = sld [smem:[#allocation24_spill]]  ;;  %s3009_s20 = scalar_lea.vmem %s315_s26, 1024 }
  0x2b   : > { %p3010_p12 = scmp.ne.s32.totalorder %s315_s26, %s3009_s20  ;;  %p3017_p0 = scmp.lt.s32.totalorder %s315_s26, %s315_s26 }
  0x2c   : > { %p3018_p5 = scmp.lt.s32.totalorder %s3009_s20, %s3009_s20 }
  0x2d   : > { %p3012_p13 = pnand %p3010_p12, %p2974_p11 }
  0x2e   : > { %p3019_p7 = por %p3018_p5, %p3017_p0 }
  0x2f   : > { %p3013_p3 = pneg %p3012_p13 }
  0x30   : > { %2832 = dma.hbm_to_vmem [thread:$0]  (!%p3371_p10), %s3882_s1, 1024, %s299_s23, [#allocation6], %s3860_s22, %s3860_s22, %s3861_s25  }
  0x31   : > { %p3020_p9 = pnand %p3019_p7, %p3013_p3 }
  0x33   : > { %3023 = shalt.err (!%p3020_p9)
}
  0x34   : > { %s3883_s3 = sld [smem:[#allocation25_spill]]  ;;  %s3035_s18 = scalar_lea.vmem %s331_s28, 1024 }
  0x35   : > { %p3036_p1 = scmp.ne.s32.totalorder %s331_s28, %s3035_s18  ;;  %p3043_p0 = scmp.lt.s32.totalorder %s331_s28, %s331_s28 }
  0x36   : > { %p3044_p3 = scmp.lt.s32.totalorder %s3035_s18, %s3035_s18 }
  0x37   : > { %p3038_p12 = pnand %p3036_p1, %p2974_p11 }
  0x38   : > { %p3045_p5 = por %p3044_p3, %p3043_p0 }
  0x39   : > { %p3039_p13 = pneg %p3038_p12 }
  0x3a   : > { %2835 = dma.hbm_to_vmem [thread:$0]  (!%p3371_p10), %s3883_s3, 1024, %s315_s26, [#allocation6], %s3860_s22, %s3860_s22, %s3861_s25  }
  0x3b   : > { %p3046_p7 = pnand %p3045_p5, %p3039_p13 }
  0x3d   : > { %3049 = shalt.err (!%p3046_p7)
}
  0x3e   : > { %s3884_s5 = sld [smem:[#allocation26_spill]]  ;;  %s40_s23 = sadd.s32 1, %s3230_s14 }
  0x3f   : > { %p41_p1 = scmp.ge.s32.totalorder %s40_s23, 2  ;;  %s43_s24 = sadd.s32 1, %s3234_s15 }
  0x40   : > { %s52_s26 = sadd.s32 1, %s3218_s11  ;;  %p59_p11 = scmp.ne.s32.totalorder %s3218_s11, %s3214_s10 }
  0x41   : > { %s3911_s23 = smov (%p41_p1, %s40_s23), 0  ;;  %s3913_s24 = smov (!%p41_p1, %s43_s24), %s3234_s15 }
  0x42   : > { %3885 = sst [smem:[#allocation22_spill]] %s3911_s23  ;;  %s48_s27 = ssub.s32 %s3230_s14, %s3911_s23 }
  0x43   : > { %p60_p9 = scmp.eq.s32.totalorder %s3238_s16, 0  ;;  %p45_p12 = scmp.ge.s32.totalorder %s3913_s24, 2 }
  0x44   : > { %2838 = dma.hbm_to_vmem [thread:$0]  (!%p3371_p10), %s3884_s5, 1024, %s331_s28, [#allocation9], %s3860_s22, %s3860_s22, %s3861_s25  }
  0x45   : > { %p3423_p13 = por %p217_p2, %p59_p11  ;;  %p3427_p10 = por %p60_p9, %p59_p11 }
  0x46   : > { %p2856_p0 = scmp.lt.s32.totalorder %s3238_s16, 4  ;;  %s3915_s24 = smov (%p45_p12, %s3913_s24), 0 }
  0x47   : > { %s3886_s29 = scalar_select %p3423_p13, 1, 0 }
  0x48   : > { %s347_s18 = sand.u32 1, %s3218_s11   ;;  %s2032_s30 = sshll.u32 %s3230_s14, 5 }
  0x49   : > { %3887 = sst [smem:[#allocation23_spill]] %s3886_s29  ;;  %s47_s20 = ssub.s32 %s3234_s15, %s3915_s24 }
  0x4a   : > { %s49_s22 = sor.u32 %s48_s27, %s47_s20  ;;  %s2031_s25 = sshll.u32 %s347_s18, 7 }
  0x4b   : > { %p50_p3 = scmp.eq.s32.totalorder %s49_s22, 0  ;;  %s2033_s1 = sshll.u32 %s3234_s15, 6 }
  0x4c   : > { %s351_s3 = scalar_lea.vmem [#allocation2], %s2031_s25  ;;  %s357_s9 = sadd.s32 %s2033_s1, %s2032_s30 }
  0x4d   : > { %s360_s5 = sshll.u32 %s351_s3, 4  ;;  %s2034_s8 = sshll.u32 %s357_s9, 6  ;;  %s361_s5 = int_to_ptr.vmem [resolvable:$true] %s360_s5 }
  0x4e   : > { %s3440_s23 = scalar_select %p50_p3, %s3218_s11, %s52_s26  }
  0x4f   : > { %p3446_p2 = pnand %p2856_p0, %p3427_p10  ;;  %s359_s27 = scalar_lea.hbm %s3846_s0, %s2034_s8 }
  0x50   : > { %s348_s22 = scalar_lea.sflag [#allocation3], %s347_s18  ;;  %s3063_s3 = scalar_lea.vmem %s361_s5, 2048 }
  0x51   : > { %p3052_p5 = pneg %p3446_p2  ;;  %p3064_p7 = scmp.ne.s32.totalorder %s361_s5, %s3063_s3 }
  0x52   : > { %s3245_s1 = smov [#allocation2]  }
  0x53   : > { %p3066_p1 = pnand %p3064_p7, %p3052_p5  ;;  %s3068_s9 = sshll.u32 %s3245_s1, 4  ;;  %s3069_s9 = int_to_ptr.vmem [resolvable:$false] %s3068_s9 }
  0x54   : > { %s3070_s25 = scalar_lea.vmem %s3069_s9, 4096  ;;  %p3071_p9 = scmp.lt.s32.totalorder %s361_s5, %s3069_s9 }
  0x55   : > { %p3067_p11 = pneg %p3066_p1  ;;  %p3072_p12 = scmp.lt.s32.totalorder %s3070_s25, %s3063_s3 }
  0x57   : > { %p3073_p10 = por %p3072_p12, %p3071_p9 }
  0x59   : > { %p3074_p0 = pnand %p3073_p10, %p3067_p11 }
  0x5b   : > { %3077 = shalt.err (!%p3074_p0)
}
  0x5c   : > { %s3890_s7 = smov 4   ;;  %s3891_s8 = smov 64  }
  0x5d   : > { %2842 = dma.hbm_to_vmem [thread:$0]  (!%p3446_p2), %s359_s27, 2048, %s361_s5, %s348_s22, %s3891_s8, %s3891_s8, %s3890_s7  }
  0x5e   : > { %372 = sbr.rel (%p3363_p8) target bundleno = 480 (0x1e0), region = 48  ;;  %s3463_s14 = sand.u32 (!%p3363_p8), 1, %s3214_s10  }
  0x5f   : > { %s3466_s26 = sshll.u32 (!%p3363_p8), %s3463_s14, 7  ;;  %s375_s28 = scalar_lea.sflag (!%p3363_p8), [#allocation3], %s3463_s14 }
  0x60   : > { %s3470_s18 = scalar_lea.vmem (!%p3363_p8), [#allocation2], %s3466_s26 }
  0x63   : > { %3189 = dma.done.wait (%p3353_p4), %s375_s28, 2048  }
  0x64   : > { %3191 = vsyncadd (%p3353_p4), %s375_s28, 4294965248  ;;  %p3892_p3 = scmp.eq.s32.totalorder %s3342_s17, 0 }
  0x66   : > { %3193 = dma.done.wait (%p3892_p3), [#allocation6], 2048   ;;  %p3893_p8 = pmov %p3892_p3 }
  0x67   : > { %p3894_p2 = pmov %p3892_p3 }
  0x68   : > { %3195 = vsyncadd (%p3893_p8), [#allocation6], 4294965248 }
  0x69   : > { %3197 = dma.done.wait (%p3894_p2), [#allocation9], 1024   ;;  %p3895_p5 = pmov %p3894_p2 }
  0x6a   : > { %v2932_v0 = vld [vmem:[#allocation5 + $0x38] sm:$0xff]   ;;  %v2933_v1 = vld [vmem:[#allocation5 + $0x30] sm:$0xff]   ;;  %v2934_v2 = vld [vmem:[#allocation5 + $0x28] sm:$0xff]   ;;  %s3556_s21 = scalar_lea.vmem [#allocation10], %s3466_s26  ;;  %s2185_s29 = sshll.u32 %s3222_s12, 5 }
  0x6b   : > { %3199 = vsyncadd (%p3895_p5), [#allocation9], 4294966272  ;;  %2649 = vmatprep.subr.bf16.mxu0 %v2932_v0  ;;  %2793 = vmatprep.subr.bf16.mxu1 %v2932_v0  ;;  %v2935_v3 = vld [vmem:[#allocation5 + $0x20] sm:$0xff]   ;;  %v2936_v6 = vld [vmem:[#allocation5 + $0x18] sm:$0xff]   ;;  %s2186_s30 = sshll.u32 %s3226_s13, 6  ;;  %s1802_s13 = sshll.u32 %s3556_s21, 4  ;;  %s3615_s13 = int_to_ptr.vmem [resolvable:$true] %s1802_s13 }
  0x6c   : > { %2650 = vmatpush3.bf16.msra.mxu0 %v2932_v0  ;;  %2801 = vmatpush3.bf16.msra.mxu1 %v2932_v0  ;;  %v3485_v4 = vld [vmem:[%s3470_s18] sm:$0xff]   ;;  %v2937_v7 = vld [vmem:[#allocation5 + $0x10] sm:$0xff]   ;;  %v2938_v8 = vld [vmem:[#allocation5 + $0x8] sm:$0xff]   ;;  %s1799_s20 = sadd.s32 %s2186_s30, %s2185_s29  ;;  %s3896_s7 = sld [smem:[#allocation27_spill]] }
  0x6d   : > { %2651 = vmatprep.subr.bf16.mxu0 %v2933_v1  ;;  %2794 = vmatprep.subr.bf16.mxu1 %v2933_v1  ;;  %v3488_v5 = vld [vmem:[%s3470_s18 + $0x40] sm:$0xff]   ;;  %v2944_v10 = vld [vmem:[#allocation7 + $0x38] sm:$0xff]   ;;  %v3493_v11 = vld [vmem:[%s3470_s18 + $0x8] sm:$0xff]   ;;  %s3594_s12 = sshll.u32 %s1799_s20, 6  ;;  %s3078_s5 = scalar_lea.vmem %s3615_s13, 2048 }
  0x6e   : > { %2665 = vmatprep.mubr.bf16.mxu0 %v3485_v4  ;;  %2681 = vmatprep.mubr.bf16.mxu1 %v3488_v5  ;;  %v2939_v9 = vld [vmem:[#allocation5] sm:$0xff]   ;;  %v2945_v12 = vld [vmem:[#allocation8 + $0x38] sm:$0xff]   ;;  %v3496_v13 = vld [vmem:[%s3470_s18 + $0x48] sm:$0xff]   ;;  %p3079_p4 = scmp.ne.s32.totalorder %s3615_s13, %s3078_s5  ;;  %s3246_s19 = smov [#allocation10]  }
  0x6f   : > { %v2946_v14 = vld [vmem:[#allocation7 + $0x30] sm:$0xff]   ;;  %v2952_v18 = vld [vmem:[#allocation7 + $0x28] sm:$0xff]   ;;  %v2950_v20 = vld [vmem:[%s3470_s18 + $0x18] sm:$0xff]  }
  0x70   : > { %2652 = vmatpush3.bf16.msra.mxu0 %v2933_v1  ;;  %2802 = vmatpush3.bf16.msra.mxu1 %v2933_v1  ;;  %v2947_v15 = vld [vmem:[#allocation8 + $0x30] sm:$0xff]   ;;  %v2953_v19 = vld [vmem:[#allocation8 + $0x28] sm:$0xff]   ;;  %v3510_v21 = vld [vmem:[%s3470_s18 + $0x58] sm:$0xff]   ;;  %p3080_p7 = pnand %p3079_p4, %p3423_p13 }
  0x71   : > { %2653 = vmatprep.subr.bf16.mxu0 %v2934_v2  ;;  %2795 = vmatprep.subr.bf16.mxu1 %v2934_v2  ;;  %v3499_v16 = vld [vmem:[%s3470_s18 + $0x10] sm:$0xff]   ;;  %v2954_v22 = vld [vmem:[#allocation7 + $0x20] sm:$0xff]   ;;  %v2960_v26 = vld [vmem:[#allocation7 + $0x18] sm:$0xff]  }
  0x72   : > { %v3502_v17 = vld [vmem:[%s3470_s18 + $0x50] sm:$0xff]   ;;  %v2955_v23 = vld [vmem:[#allocation8 + $0x20] sm:$0xff]   ;;  %v2961_v27 = vld [vmem:[#allocation8 + $0x18] sm:$0xff]   ;;  %s3613_s8 = scalar_lea.hbm %s3896_s7, %s3594_s12  ;;  %p3081_p1 = pneg %p3080_p7 }
  0x73   : > { %v2956_v24 = vld [vmem:[%s3470_s18 + $0x20] sm:$0xff]   ;;  %v2958_v28 = vld [vmem:[%s3470_s18 + $0x28] sm:$0xff]   ;;  %v2962_v30 = vld [vmem:[#allocation7 + $0x10] sm:$0xff]  }
  0x74   : > { %2654 = vmatpush3.bf16.msra.mxu0 %v2934_v2  ;;  %2803 = vmatpush3.bf16.msra.mxu1 %v2934_v2  ;;  %v3514_v25 = vld [vmem:[%s3470_s18 + $0x60] sm:$0xff]   ;;  %v2959_v29 = vld [vmem:[%s3470_s18 + $0x68] sm:$0xff]   ;;  %v2963_v31 = vld [vmem:[#allocation8 + $0x10] sm:$0xff]  }
  0x75   : > { %2655 = vmatprep.subr.bf16.mxu0 %v2935_v3  ;;  %2796 = vmatprep.subr.bf16.mxu1 %v2935_v3  ;;  %v2964_v32 = vld [vmem:[%s3470_s18 + $0x30] sm:$0xff]   ;;  %v2968_v34 = vld [vmem:[#allocation7 + $0x8] sm:$0xff]   ;;  %v2966_v36 = vld [vmem:[%s3470_s18 + $0x38] sm:$0xff]  }
  0x76   : > { %v2965_v33 = vld [vmem:[%s3470_s18 + $0x70] sm:$0xff]   ;;  %v2969_v35 = vld [vmem:[#allocation8 + $0x8] sm:$0xff]   ;;  %v2967_v37 = vld [vmem:[%s3470_s18 + $0x78] sm:$0xff]   ;;  %s1777_s18 = scalar_lea.sflag [#allocation4], %s3463_s14 }
  0x77   : > { %v2970_v38 = vld [vmem:[#allocation7] sm:$0xff]  }
  0x78   : > { %2656 = vmatpush3.bf16.msra.mxu0 %v2935_v3  ;;  %2804 = vmatpush3.bf16.msra.mxu1 %v2935_v3  ;;  %v2971_v39 = vld [vmem:[#allocation8] sm:$0xff]  }
  0x79   : > { %2657 = vmatprep.subr.bf16.mxu0 %v2936_v6  ;;  %2797 = vmatprep.subr.bf16.mxu1 %v2936_v6  ;;  %v3543_v40 = vld [vmem:[%s3848_s2] ss:$0 sm:$0xff] }
  0x7c   : > { %2658 = vmatpush3.bf16.msra.mxu0 %v2936_v6  ;;  %2805 = vmatpush3.bf16.msra.mxu1 %v2936_v6 }
  0x7d   : > { %2659 = vmatprep.subr.bf16.mxu0 %v2937_v7  ;;  %2798 = vmatprep.subr.bf16.mxu1 %v2937_v7 }
  0x80   : > { %2660 = vmatpush3.bf16.msra.mxu0 %v2937_v7  ;;  %2806 = vmatpush3.bf16.msra.mxu1 %v2937_v7 }
  0x81   : > { %2661 = vmatprep.subr.bf16.mxu0 %v2938_v8  ;;  %2799 = vmatprep.subr.bf16.mxu1 %v2938_v8 }
  0x84   : > { %2662 = vmatpush3.bf16.msra.mxu0 %v2938_v8  ;;  %2807 = vmatpush3.bf16.msra.mxu1 %v2938_v8 }
  0x85   : > { %2663 = vmatprep.subr.bf16.mxu0 %v2939_v9  ;;  %2800 = vmatprep.subr.bf16.mxu1 %v2939_v9 }
  0x88   : > { %2664 = vmatpush3.bf16.msra.mxu0 %v2939_v9  ;;  %2808 = vmatpush3.bf16.msra.mxu1 %v2939_v9 }
  0x89   : > { %2697 = vmatprep.subr.bf16.mxu1 %v2944_v10  ;;  %2745 = vmatprep.subr.bf16.mxu0 %v2945_v12 }
  0x8b   : > { %2666 = vmatmul.mubr.bf16.vlgmr.msra.gmra.mxu0 %v3493_v11  ;;  %2682 = vmatmul.mubr.bf16.vlgmr.msra.gmra.mxu1 %v3496_v13 }
  0x8c   : > { %2698 = vmatpush3.bf16.msra.mxu1 %v2944_v10  ;;  %2746 = vmatpush3.bf16.msra.mxu0 %v2945_v12 }
  0x8d   : > { %2699 = vmatprep.subr.bf16.mxu1 %v2946_v14  ;;  %2747 = vmatprep.subr.bf16.mxu0 %v2947_v15 }
  0x8e   : > { %2669 = vmatprep.mubr.bf16.mxu0 %v3499_v16  ;;  %2685 = vmatprep.mubr.bf16.mxu1 %v3502_v17 }
  0x90   : > { %2700 = vmatpush3.bf16.msra.mxu1 %v2946_v14  ;;  %2748 = vmatpush3.bf16.msra.mxu0 %v2947_v15 }
  0x91   : > { %2701 = vmatprep.subr.bf16.mxu1 %v2952_v18  ;;  %2749 = vmatprep.subr.bf16.mxu0 %v2953_v19 }
  0x93   : > { %2670 = vmatmul.mubr.bf16.gmra.mxu0 %v2950_v20  ;;  %2686 = vmatmul.mubr.bf16.gmra.mxu1 %v3510_v21 }
  0x94   : > { %2702 = vmatpush3.bf16.msra.mxu1 %v2952_v18  ;;  %2750 = vmatpush3.bf16.msra.mxu0 %v2953_v19 }
  0x95   : > { %2703 = vmatprep.subr.bf16.mxu1 %v2954_v22  ;;  %2751 = vmatprep.subr.bf16.mxu0 %v2955_v23 }
  0x96   : > { %2673 = vmatprep.mubr.bf16.mxu0 %v2956_v24  ;;  %2689 = vmatprep.mubr.bf16.mxu1 %v3514_v25 }
  0x98   : > { %2704 = vmatpush3.bf16.msra.mxu1 %v2954_v22  ;;  %2752 = vmatpush3.bf16.msra.mxu0 %v2955_v23 }
  0x99   : > { %2705 = vmatprep.subr.bf16.mxu1 %v2960_v26  ;;  %2753 = vmatprep.subr.bf16.mxu0 %v2961_v27 }
  0x9b   : > { %2674 = vmatmul.mubr.bf16.gmra.mxu0 %v2958_v28  ;;  %2690 = vmatmul.mubr.bf16.gmra.mxu1 %v2959_v29 }
  0x9c   : > { %2706 = vmatpush3.bf16.msra.mxu1 %v2960_v26  ;;  %2754 = vmatpush3.bf16.msra.mxu0 %v2961_v27 }
  0x9d   : > { %2707 = vmatprep.subr.bf16.mxu1 %v2962_v30  ;;  %2755 = vmatprep.subr.bf16.mxu0 %v2963_v31 }
  0x9e   : > { %2677 = vmatprep.mubr.bf16.mxu0 %v2964_v32  ;;  %2693 = vmatprep.mubr.bf16.mxu1 %v2965_v33 }
  0xa0   : > { %2708 = vmatpush3.bf16.msra.mxu1 %v2962_v30  ;;  %2756 = vmatpush3.bf16.msra.mxu0 %v2963_v31 }
  0xa1   : > { %2709 = vmatprep.subr.bf16.mxu1 %v2968_v34  ;;  %2757 = vmatprep.subr.bf16.mxu0 %v2969_v35 }
  0xa3   : > { %2678 = vmatmul.mubr.bf16.gmra.mxu0 %v2966_v36  ;;  %2694 = vmatmul.mubr.bf16.gmra.mxu1 %v2967_v37 }
  0xa4   : > { %2710 = vmatpush3.bf16.msra.mxu1 %v2968_v34  ;;  %2758 = vmatpush3.bf16.msra.mxu0 %v2969_v35 }
  0xa5   : > { %2711 = vmatprep.subr.bf16.mxu1 %v2970_v38  ;;  %2759 = vmatprep.subr.bf16.mxu0 %v2971_v39 }
  0xa6   : > { %2713 = vmatprep.mubr.bf16.mxu1 %v3485_v4  ;;  %2761 = vmatprep.mubr.bf16.mxu0 %v3485_v4 }
  0xa8   : > { %2712 = vmatpush3.bf16.msra.mxu1 %v2970_v38  ;;  %2760 = vmatpush3.bf16.msra.mxu0 %v2971_v39 }
  0xab   : > { %2714 = vmatmul.mubr.bf16.vlgmr.msra.gmra.mxu1 %v3493_v11  ;;  %2762 = vmatmul.mubr.bf16.vlgmr.msra.gmra.mxu0 %v3493_v11 }
  0xac   : > { %2717 = vmatprep.mubr.bf16.mxu1 %v3499_v16  ;;  %2765 = vmatprep.mubr.bf16.mxu0 %v3499_v16 }
  0xb3   : > { %2718 = vmatmul.mubr.bf16.gmra.mxu1 %v2950_v20  ;;  %2766 = vmatmul.mubr.bf16.gmra.mxu0 %v2950_v20 }
  0xb4   : > { %2721 = vmatprep.mubr.bf16.mxu1 %v2956_v24  ;;  %2769 = vmatprep.mubr.bf16.mxu0 %v2956_v24 }
  0xbb   : > { %2722 = vmatmul.mubr.bf16.gmra.mxu1 %v2958_v28  ;;  %2770 = vmatmul.mubr.bf16.gmra.mxu0 %v2958_v28 }
  0xbc   : > { %2725 = vmatprep.mubr.bf16.mxu1 %v2964_v32  ;;  %2773 = vmatprep.mubr.bf16.mxu0 %v2964_v32 }
  0xc3   : > { %2726 = vmatmul.mubr.bf16.gmra.mxu1 %v2966_v36  ;;  %2774 = vmatmul.mubr.bf16.gmra.mxu0 %v2966_v36 }
  0xc4   : > { %2729 = vmatprep.mubr.bf16.mxu1 %v3488_v5  ;;  %2777 = vmatprep.mubr.bf16.mxu0 %v3488_v5 }
  0xcb   : > { %2730 = vmatmul.mubr.bf16.gmra.mxu1 %v3496_v13  ;;  %2778 = vmatmul.mubr.bf16.gmra.mxu0 %v3496_v13 }
  0xcc   : > { %2733 = vmatprep.mubr.bf16.mxu1 %v3502_v17  ;;  %2781 = vmatprep.mubr.bf16.mxu0 %v3502_v17 }
  0xd3   : > { %2734 = vmatmul.mubr.bf16.gmra.mxu1 %v3510_v21  ;;  %2782 = vmatmul.mubr.bf16.gmra.mxu0 %v3510_v21 }
  0xd4   : > { %2737 = vmatprep.mubr.bf16.mxu1 %v3514_v25  ;;  %2785 = vmatprep.mubr.bf16.mxu0 %v3514_v25 }
  0xdb   : > { %2738 = vmatmul.mubr.bf16.gmra.mxu1 %v2959_v29  ;;  %2786 = vmatmul.mubr.bf16.gmra.mxu0 %v2959_v29 }
  0xdc   : > { %2741 = vmatprep.mubr.bf16.mxu1 %v2965_v33  ;;  %2789 = vmatprep.mubr.bf16.mxu0 %v2965_v33 }
  0xe3   : > { %2742 = vmatmul.mubr.bf16.gmra.mxu1 %v2967_v37  ;;  %2790 = vmatmul.mubr.bf16.gmra.mxu0 %v2967_v37 }
 0x14b   : > { %v2667_v41 = vpop.f32.mrf.mxu0  ;;  %v2683_v42 = vpop.f32.mrf.mxu1 }
 0x14c   : > { %v682_v43 = vadd.f32 %v2667_v41, %v3543_v40  ;;  %v746_v44 = vadd.f32 %v2683_v42, %v3543_v40 }
 0x14d   : > { %v673_v45 = vpop.f32.mrf.mxu0  ;;  %v737_v46 = vpop.f32.mrf.mxu1 }
 0x14e   : > { %v674_v47 = vadd.f32 %v3543_v40, %v673_v45  ;;  %v738_v48 = vadd.f32 %v3543_v40, %v737_v46  ;;  %v802_v53 = vmul.f32 0.125, %v682_v43  ;;  %v818_v54 = vmul.f32 0.125, %v746_v44 }
 0x14f   : > { %v2668_v49 = vpop.f32.mrf.mxu0  ;;  %v2684_v50 = vpop.f32.mrf.mxu1 }
 0x150   : > { %v685_v51 = vadd.f32 %v2668_v49, %v3543_v40  ;;  %v749_v52 = vadd.f32 %v2684_v50, %v3543_v40  ;;  %v800_v61 = vmul.f32 0.125, %v674_v47  ;;  %v816_v62 = vmul.f32 0.125, %v738_v48 }
 0x151   : > { %v676_v55 = vpop.f32.mrf.mxu0  ;;  %v740_v56 = vpop.f32.mrf.mxu1 }
 0x152   : > { %v803_v57 = vmul.f32 0.125, %v685_v51  ;;  %v819_v58 = vmul.f32 0.125, %v749_v52  ;;  %v677_v59 = vadd.f32 %v3543_v40, %v676_v55  ;;  %v741_v60 = vadd.f32 %v3543_v40, %v740_v56 }
 0x153   : > { %v2671_v63 = vpop.f32.mrf.mxu0  ;;  %v2687_v0 = vpop.f32.mrf.mxu1 }
 0x154   : > { %v2300_v1 = vpack.c.bf16 %v803_v57, %v802_v53  ;;  %v2340_v2 = vpack.c.bf16 %v819_v58, %v818_v54  ;;  %v801_v3 = vmul.f32 0.125, %v677_v59  ;;  %v817_v4 = vmul.f32 0.125, %v741_v60 }
 0x155   : > { %v698_v5 = vadd.f32 %v2671_v63, %v3543_v40  ;;  %v762_v6 = vadd.f32 %v2687_v0, %v3543_v40  ;;  %v689_v7 = vpop.f32.mrf.mxu0  ;;  %v753_v8 = vpop.f32.mrf.mxu1 }
 0x156   : > { %2532 = vst [vmem:[%s3556_s21 + $0x8] sm:$0xff] %v2300_v1   ;;  %2540 = vst [vmem:[%s3556_s21 + $0x48] sm:$0xff] %v2340_v2   ;;  %v2295_v9 = vpack.c.bf16 %v801_v3, %v800_v61  ;;  %v2335_v10 = vpack.c.bf16 %v817_v4, %v816_v62  ;;  %v690_v11 = vadd.f32 %v3543_v40, %v689_v7 }
 0x157   : > { %v754_v12 = vadd.f32 %v3543_v40, %v753_v8  ;;  %v2672_v13 = vpop.f32.mrf.mxu0  ;;  %v2688_v14 = vpop.f32.mrf.mxu1  ;;  %v806_v17 = vmul.f32 0.125, %v698_v5  ;;  %v822_v18 = vmul.f32 0.125, %v762_v6 }
 0x158   : > { %2296 = vst [vmem:[%s3556_s21] sm:$0xff] %v2295_v9   ;;  %2539 = vst [vmem:[%s3556_s21 + $0x40] sm:$0xff] %v2335_v10   ;;  %v701_v15 = vadd.f32 %v2672_v13, %v3543_v40  ;;  %v765_v16 = vadd.f32 %v2688_v14, %v3543_v40  ;;  %v804_v25 = vmul.f32 0.125, %v690_v11 }
 0x159   : > { %v692_v19 = vpop.f32.mrf.mxu0  ;;  %v756_v20 = vpop.f32.mrf.mxu1  ;;  %v820_v26 = vmul.f32 0.125, %v754_v12 }
 0x15a   : > { %v807_v21 = vmul.f32 0.125, %v701_v15  ;;  %v823_v22 = vmul.f32 0.125, %v765_v16  ;;  %v693_v23 = vadd.f32 %v3543_v40, %v692_v19  ;;  %v757_v24 = vadd.f32 %v3543_v40, %v756_v20 }
 0x15b   : > { %v2675_v27 = vpop.f32.mrf.mxu0  ;;  %v2691_v28 = vpop.f32.mrf.mxu1 }
 0x15c   : > { %v2310_v29 = vpack.c.bf16 %v807_v21, %v806_v17  ;;  %v2350_v30 = vpack.c.bf16 %v823_v22, %v822_v18  ;;  %v805_v31 = vmul.f32 0.125, %v693_v23  ;;  %v821_v32 = vmul.f32 0.125, %v757_v24 }
 0x15d   : > { %v714_v33 = vadd.f32 %v2675_v27, %v3543_v40  ;;  %v778_v34 = vadd.f32 %v2691_v28, %v3543_v40  ;;  %v705_v35 = vpop.f32.mrf.mxu0  ;;  %v769_v36 = vpop.f32.mrf.mxu1 }
 0x15e   : > { %2534 = vst [vmem:[%s3556_s21 + $0x18] sm:$0xff] %v2310_v29   ;;  %2542 = vst [vmem:[%s3556_s21 + $0x58] sm:$0xff] %v2350_v30   ;;  %v2305_v37 = vpack.c.bf16 %v805_v31, %v804_v25  ;;  %v2345_v38 = vpack.c.bf16 %v821_v32, %v820_v26  ;;  %v706_v39 = vadd.f32 %v3543_v40, %v705_v35  ;;  %v3600_v26 = vld [vmem:[%s3850_s4] ss:$0 sm:$0xff] }
 0x15f   : > { %v770_v41 = vadd.f32 %v3543_v40, %v769_v36  ;;  %v2676_v42 = vpop.f32.mrf.mxu0  ;;  %v2692_v43 = vpop.f32.mrf.mxu1  ;;  %v810_v46 = vmul.f32 0.125, %v714_v33  ;;  %v826_v47 = vmul.f32 0.125, %v778_v34 }
 0x160   : > { %2533 = vst [vmem:[%s3556_s21 + $0x10] sm:$0xff] %v2305_v37   ;;  %2541 = vst [vmem:[%s3556_s21 + $0x50] sm:$0xff] %v2345_v38   ;;  %v717_v44 = vadd.f32 %v2676_v42, %v3543_v40  ;;  %v781_v45 = vadd.f32 %v2692_v43, %v3543_v40  ;;  %v808_v54 = vmul.f32 0.125, %v706_v39 }
 0x161   : > { %v708_v48 = vpop.f32.mrf.mxu0  ;;  %v772_v49 = vpop.f32.mrf.mxu1  ;;  %v824_v55 = vmul.f32 0.125, %v770_v41 }
 0x162   : > { %v811_v50 = vmul.f32 0.125, %v717_v44  ;;  %v827_v51 = vmul.f32 0.125, %v781_v45  ;;  %v709_v52 = vadd.f32 %v3543_v40, %v708_v48  ;;  %v773_v53 = vadd.f32 %v3543_v40, %v772_v49 }
 0x163   : > { %v2679_v56 = vpop.f32.mrf.mxu0  ;;  %v2695_v57 = vpop.f32.mrf.mxu1 }
 0x164   : > { %v2320_v58 = vpack.c.bf16 %v811_v50, %v810_v46  ;;  %v2360_v59 = vpack.c.bf16 %v827_v51, %v826_v47  ;;  %v809_v60 = vmul.f32 0.125, %v709_v52  ;;  %v825_v61 = vmul.f32 0.125, %v773_v53 }
 0x165   : > { %v730_v62 = vadd.f32 %v2679_v56, %v3543_v40  ;;  %v794_v63 = vadd.f32 %v2695_v57, %v3543_v40  ;;  %v721_v0 = vpop.f32.mrf.mxu0  ;;  %v785_v1 = vpop.f32.mrf.mxu1 }
 0x166   : > { %2536 = vst [vmem:[%s3556_s21 + $0x28] sm:$0xff] %v2320_v58   ;;  %2544 = vst [vmem:[%s3556_s21 + $0x68] sm:$0xff] %v2360_v59   ;;  %v2315_v2 = vpack.c.bf16 %v809_v60, %v808_v54  ;;  %v2355_v3 = vpack.c.bf16 %v825_v61, %v824_v55  ;;  %v722_v4 = vadd.f32 %v3543_v40, %v721_v0 }
 0x167   : > { %v786_v5 = vadd.f32 %v3543_v40, %v785_v1  ;;  %v2680_v6 = vpop.f32.mrf.mxu0  ;;  %v2696_v7 = vpop.f32.mrf.mxu1  ;;  %v814_v10 = vmul.f32 0.125, %v730_v62  ;;  %v830_v11 = vmul.f32 0.125, %v794_v63 }
 0x168   : > { %2535 = vst [vmem:[%s3556_s21 + $0x20] sm:$0xff] %v2315_v2   ;;  %2543 = vst [vmem:[%s3556_s21 + $0x60] sm:$0xff] %v2355_v3   ;;  %v733_v8 = vadd.f32 %v2680_v6, %v3543_v40  ;;  %v797_v9 = vadd.f32 %v2696_v7, %v3543_v40  ;;  %v812_v18 = vmul.f32 0.125, %v722_v4 }
 0x169   : > { %v724_v12 = vpop.f32.mrf.mxu0  ;;  %v788_v13 = vpop.f32.mrf.mxu1  ;;  %v828_v19 = vmul.f32 0.125, %v786_v5 }
 0x16a   : > { %v815_v14 = vmul.f32 0.125, %v733_v8  ;;  %v831_v15 = vmul.f32 0.125, %v797_v9  ;;  %v725_v16 = vadd.f32 %v3543_v40, %v724_v12  ;;  %v789_v17 = vadd.f32 %v3543_v40, %v788_v13  ;;  %v3605_v40 = vld [vmem:[%s3852_s6] ss:$0 sm:$0xff] }
 0x16b   : > { %v2715_v20 = vpop.f32.mrf.mxu1  ;;  %v2763_v21 = vpop.f32.mrf.mxu0 }
 0x16c   : > { %v2330_v22 = vpack.c.bf16 %v815_v14, %v814_v10  ;;  %v2370_v23 = vpack.c.bf16 %v831_v15, %v830_v11  ;;  %v813_v24 = vmul.f32 0.125, %v725_v16  ;;  %v829_v25 = vmul.f32 0.125, %v789_v17 }
 0x16d   : > { %v1097_v27 = vpop.f32.mrf.mxu1  ;;  %v1489_v28 = vpop.f32.mrf.mxu0  ;;  %v1106_v33 = vadd.f32 %v2715_v20, %v3600_v26  ;;  %v1498_v34 = vadd.f32 %v2763_v21, %v3605_v40 }
 0x16e   : > { %2538 = vst [vmem:[%s3556_s21 + $0x38] sm:$0xff] %v2330_v22   ;;  %2546 = vst [vmem:[%s3556_s21 + $0x78] sm:$0xff] %v2370_v23   ;;  %v2325_v29 = vpack.c.bf16 %v813_v24, %v812_v18  ;;  %v2365_v30 = vpack.c.bf16 %v829_v25, %v828_v19  ;;  %v1098_v37 = vadd.f32 %v3600_v26, %v1097_v27 }
 0x16f   : > { %v2716_v31 = vpop.f32.mrf.mxu1  ;;  %v2764_v32 = vpop.f32.mrf.mxu0  ;;  %v1490_v38 = vadd.f32 %v3605_v40, %v1489_v28 }
 0x170   : > { %2537 = vst [vmem:[%s3556_s21 + $0x30] sm:$0xff] %v2325_v29   ;;  %2545 = vst [vmem:[%s3556_s21 + $0x70] sm:$0xff] %v2365_v30   ;;  %v1109_v35 = vadd.f32 %v2716_v31, %v3600_v26  ;;  %v1501_v36 = vadd.f32 %v2764_v32, %v3605_v40  ;;  %s3082_s21 = sshll.u32 %s3246_s19, 4  ;;  %s3083_s21 = int_to_ptr.vmem [resolvable:$false] %s3082_s21 }
 0x171   : > { %v1100_v39 = vpop.f32.mrf.mxu1  ;;  %v1492_v41 = vpop.f32.mrf.mxu0  ;;  %s3084_s29 = scalar_lea.vmem %s3083_s21, 4096  ;;  %p3085_p11 = scmp.lt.s32.totalorder %s3615_s13, %s3083_s21 }
 0x172   : > { %p3086_p9 = scmp.lt.s32.totalorder %s3084_s29, %s3078_s5 }
 0x174   : > { %p3087_p12 = por %p3086_p9, %p3085_p11 }
 0x176   : > { %p3088_p10 = pnand %p3087_p12, %p3081_p1 }
 0x178   : > { %3091 = shalt.err (!%p3088_p10)
}
 0x179   : > { %s3092_s30 = scalar_lea.hbm %s3613_s8, 2048  ;;  %s3096_s22 = scalar_lea.hbm %s3896_s7, 8192 }
 0x17a   : > { %p3093_p0 = scmp.ne.s32.totalorder %s3613_s8, %s3092_s30  ;;  %p3097_p2 = scmp.lt.s32.totalorder %s3613_s8, %s3896_s7 }
 0x17b   : > { %p3098_p5 = scmp.lt.s32.totalorder %s3096_s22, %s3092_s30 }
 0x17c   : > { %p3094_p3 = pnand %p3093_p0, %p3423_p13 }
 0x17d   : > { %p3099_p4 = por %p3098_p5, %p3097_p2 }
 0x17e   : > { %p3095_p8 = pneg %p3094_p3 }
 0x180   : > { %p3100_p7 = pnand %p3099_p4, %p3095_p8 }
 0x182   : > { %3103 = shalt.err (!%p3100_p7)
}
 0x183   : > { %s3247_s9 = smov 64   ;;  %s3248_s25 = smov 4   ;;  %v2380_v42 = vpack.c.bf16 %v1109_v35, %v1106_v33  ;;  %v2460_v43 = vpack.c.bf16 %v1501_v36, %v1498_v34  ;;  %v1101_v44 = vadd.f32 %v3600_v26, %v1100_v39  ;;  %v1493_v45 = vadd.f32 %v3605_v40, %v1492_v41  ;;  %v2719_v46 = vpop.f32.mrf.mxu1  ;;  %v2767_v47 = vpop.f32.mrf.mxu0 }
 0x184   : > { %2823 = dma.vmem_to_hbm [thread:$0]  (%p3423_p13), %s3615_s13, 2048, %s3613_s8, %s1777_s18, %s3247_s9, %s3247_s9, %s3248_s25   ;;  %v1122_v54 = vadd.f32 %v2719_v46, %v3600_v26  ;;  %v1514_v55 = vadd.f32 %v2767_v47, %v3605_v40 }
 0x185   : > { %s3654_s5 = scalar_lea.vmem [#allocation11], %s3466_s26  ;;  %s3658_s19 = scalar_lea.vmem [#allocation13], %s3466_s26  ;;  %v2375_v48 = vpack.c.bf16 %v1101_v44, %v1098_v37  ;;  %v2455_v49 = vpack.c.bf16 %v1493_v45, %v1490_v38  ;;  %v1113_v50 = vpop.f32.mrf.mxu1  ;;  %v1505_v51 = vpop.f32.mrf.mxu0 }
 0x186   : > { %2547 = vst [vmem:[%s3654_s5 + $0x8] sm:$0xff] %v2380_v42   ;;  %2562 = vst [vmem:[%s3658_s19 + $0x8] sm:$0xff] %v2460_v43   ;;  %v1114_v58 = vadd.f32 %v3600_v26, %v1113_v50  ;;  %v1506_v59 = vadd.f32 %v3605_v40, %v1505_v51  ;;  %s1781_s14 = sand.u32 1, %s3342_s17   ;;  %s1820_s26 = sshll.u32 %s3654_s5, 4  ;;  %s3754_s26 = int_to_ptr.vmem [resolvable:$true] %s1820_s26 }
 0x187   : > { %2376 = vst [vmem:[%s3654_s5] sm:$0xff] %v2375_v48   ;;  %2456 = vst [vmem:[%s3658_s19] sm:$0xff] %v2455_v49   ;;  %v2720_v52 = vpop.f32.mrf.mxu1  ;;  %v2768_v53 = vpop.f32.mrf.mxu0  ;;  %s1838_s13 = sshll.u32 %s3658_s19, 4  ;;  %s3898_s18 = sld [smem:[#allocation28_spill]]  ;;  %s3762_s13 = int_to_ptr.vmem [resolvable:$true] %s1838_s13 }
 0x188   : > { %v1125_v56 = vadd.f32 %v2720_v52, %v3600_v26  ;;  %v1517_v57 = vadd.f32 %v2768_v53, %v3605_v40  ;;  %s3899_s20 = sld [smem:[#allocation29_spill]]  ;;  %s3766_s22 = scalar_lea.sflag [#allocation12], %s1781_s14 }
 0x189   : > { %v1116_v60 = vpop.f32.mrf.mxu1  ;;  %v1508_v61 = vpop.f32.mrf.mxu0  ;;  %s3104_s3 = scalar_lea.vmem %s3754_s26, 2048  ;;  %s3249_s1 = smov [#allocation11]  }
 0x18a   : > { %v2390_v62 = vpack.c.bf16 %v1125_v56, %v1122_v54  ;;  %v2470_v63 = vpack.c.bf16 %v1517_v57, %v1514_v55  ;;  %v1117_v0 = vadd.f32 %v3600_v26, %v1116_v60  ;;  %v1509_v1 = vadd.f32 %v3605_v40, %v1508_v61  ;;  %p3105_p1 = scmp.ne.s32.totalorder %s3754_s26, %s3104_s3  ;;  %s3108_s17 = sshll.u32 %s3249_s1, 4  ;;  %s3109_s17 = int_to_ptr.vmem [resolvable:$false] %s3108_s17 }
 0x18b   : > { %v2723_v2 = vpop.f32.mrf.mxu1  ;;  %v2771_v3 = vpop.f32.mrf.mxu0  ;;  %s3110_s8 = scalar_lea.vmem %s3109_s17, 4096  ;;  %p3111_p12 = scmp.lt.s32.totalorder %s3754_s26, %s3109_s17 }
 0x18c   : > { %2549 = vst [vmem:[%s3654_s5 + $0x18] sm:$0xff] %v2390_v62   ;;  %2564 = vst [vmem:[%s3658_s19 + $0x18] sm:$0xff] %v2470_v63   ;;  %v2385_v4 = vpack.c.bf16 %v1117_v0, %v1114_v58  ;;  %v2465_v5 = vpack.c.bf16 %v1509_v1, %v1506_v59  ;;  %v1138_v10 = vadd.f32 %v2723_v2, %v3600_v26  ;;  %p3106_p11 = pnand %p3105_p1, %p3423_p13  ;;  %p3112_p10 = scmp.lt.s32.totalorder %s3110_s8, %s3104_s3 }
 0x18d   : > { %v1129_v6 = vpop.f32.mrf.mxu1  ;;  %v1521_v7 = vpop.f32.mrf.mxu0  ;;  %v1530_v11 = vadd.f32 %v2771_v3, %v3605_v40  ;;  %s3752_s21 = scalar_lea.hbm %s3898_s18, %s3594_s12 }
 0x18e   : > { %2548 = vst [vmem:[%s3654_s5 + $0x10] sm:$0xff] %v2385_v4   ;;  %2563 = vst [vmem:[%s3658_s19 + $0x10] sm:$0xff] %v2465_v5   ;;  %v1130_v14 = vadd.f32 %v3600_v26, %v1129_v6  ;;  %v1522_v15 = vadd.f32 %v3605_v40, %v1521_v7  ;;  %s3760_s27 = scalar_lea.hbm %s3899_s20, %s3594_s12  ;;  %p3107_p9 = pneg %p3106_p11 }
 0x18f   : > { %v2724_v8 = vpop.f32.mrf.mxu1  ;;  %v2772_v9 = vpop.f32.mrf.mxu0  ;;  %p3113_p0 = por %p3112_p10, %p3111_p12 }
 0x190   : > { %v1141_v12 = vadd.f32 %v2724_v8, %v3600_v26  ;;  %v1533_v13 = vadd.f32 %v2772_v9, %v3605_v40 }
 0x191   : > { %v1132_v16 = vpop.f32.mrf.mxu1  ;;  %v1524_v17 = vpop.f32.mrf.mxu0  ;;  %p3114_p3 = pnand %p3113_p0, %p3107_p9 }
 0x192   : > { %v2400_v18 = vpack.c.bf16 %v1141_v12, %v1138_v10  ;;  %v2480_v19 = vpack.c.bf16 %v1533_v13, %v1530_v11  ;;  %v1133_v20 = vadd.f32 %v3600_v26, %v1132_v16  ;;  %v1525_v21 = vadd.f32 %v3605_v40, %v1524_v17 }
 0x193   : > { %v2727_v22 = vpop.f32.mrf.mxu1  ;;  %v2775_v23 = vpop.f32.mrf.mxu0 }
 0x194   : > { %2551 = vst [vmem:[%s3654_s5 + $0x28] sm:$0xff] %v2400_v18   ;;  %2566 = vst [vmem:[%s3658_s19 + $0x28] sm:$0xff] %v2480_v19   ;;  %v2395_v24 = vpack.c.bf16 %v1133_v20, %v1130_v14  ;;  %v2475_v25 = vpack.c.bf16 %v1525_v21, %v1522_v15  ;;  %v1154_v31 = vadd.f32 %v2727_v22, %v3600_v26 }
 0x195   : > { %v1145_v27 = vpop.f32.mrf.mxu1  ;;  %v1537_v28 = vpop.f32.mrf.mxu0  ;;  %v1546_v32 = vadd.f32 %v2775_v23, %v3605_v40 }
 0x196   : > { %2550 = vst [vmem:[%s3654_s5 + $0x20] sm:$0xff] %v2395_v24   ;;  %2565 = vst [vmem:[%s3658_s19 + $0x20] sm:$0xff] %v2475_v25   ;;  %v1146_v35 = vadd.f32 %v3600_v26, %v1145_v27  ;;  %v1538_v36 = vadd.f32 %v3605_v40, %v1537_v28 }
 0x197   : > { %v2728_v29 = vpop.f32.mrf.mxu1  ;;  %v2776_v30 = vpop.f32.mrf.mxu0 }
 0x198   : > { %v1157_v33 = vadd.f32 %v2728_v29, %v3600_v26  ;;  %v1549_v34 = vadd.f32 %v2776_v30, %v3605_v40 }
 0x199   : > { %v1148_v37 = vpop.f32.mrf.mxu1  ;;  %v1540_v38 = vpop.f32.mrf.mxu0 }
 0x19a   : > { %v2410_v39 = vpack.c.bf16 %v1157_v33, %v1154_v31  ;;  %v2490_v41 = vpack.c.bf16 %v1549_v34, %v1546_v32  ;;  %v1149_v42 = vadd.f32 %v3600_v26, %v1148_v37  ;;  %v1541_v43 = vadd.f32 %v3605_v40, %v1540_v38 }
 0x19b   : > { %v2731_v44 = vpop.f32.mrf.mxu1  ;;  %v2779_v45 = vpop.f32.mrf.mxu0 }
 0x19c   : > { %2553 = vst [vmem:[%s3654_s5 + $0x38] sm:$0xff] %v2410_v39   ;;  %2568 = vst [vmem:[%s3658_s19 + $0x38] sm:$0xff] %v2490_v41   ;;  %v2405_v46 = vpack.c.bf16 %v1149_v42, %v1146_v35  ;;  %v2485_v47 = vpack.c.bf16 %v1541_v43, %v1538_v36  ;;  %v1170_v52 = vadd.f32 %v2731_v44, %v3600_v26 }
 0x19d   : > { %v1161_v48 = vpop.f32.mrf.mxu1  ;;  %v1553_v49 = vpop.f32.mrf.mxu0  ;;  %v1562_v53 = vadd.f32 %v2779_v45, %v3605_v40 }
 0x19e   : > { %2552 = vst [vmem:[%s3654_s5 + $0x30] sm:$0xff] %v2405_v46   ;;  %2567 = vst [vmem:[%s3658_s19 + $0x30] sm:$0xff] %v2485_v47   ;;  %v1162_v56 = vadd.f32 %v3600_v26, %v1161_v48  ;;  %v1554_v57 = vadd.f32 %v3605_v40, %v1553_v49 }
 0x19f   : > { %v2732_v50 = vpop.f32.mrf.mxu1  ;;  %v2780_v51 = vpop.f32.mrf.mxu0 }
 0x1a0   : > { %v1173_v54 = vadd.f32 %v2732_v50, %v3600_v26  ;;  %v1565_v55 = vadd.f32 %v2780_v51, %v3605_v40 }
 0x1a1   : > { %v1164_v58 = vpop.f32.mrf.mxu1  ;;  %v1556_v59 = vpop.f32.mrf.mxu0 }
 0x1a2   : > { %v2420_v60 = vpack.c.bf16 %v1173_v54, %v1170_v52  ;;  %v2500_v61 = vpack.c.bf16 %v1565_v55, %v1562_v53  ;;  %v1165_v62 = vadd.f32 %v3600_v26, %v1164_v58  ;;  %v1557_v63 = vadd.f32 %v3605_v40, %v1556_v59 }
 0x1a3   : > { %v2735_v0 = vpop.f32.mrf.mxu1  ;;  %v2783_v1 = vpop.f32.mrf.mxu0 }
 0x1a4   : > { %2555 = vst [vmem:[%s3654_s5 + $0x48] sm:$0xff] %v2420_v60   ;;  %2570 = vst [vmem:[%s3658_s19 + $0x48] sm:$0xff] %v2500_v61   ;;  %v2415_v2 = vpack.c.bf16 %v1165_v62, %v1162_v56  ;;  %v2495_v3 = vpack.c.bf16 %v1557_v63, %v1554_v57  ;;  %v1186_v8 = vadd.f32 %v2735_v0, %v3600_v26 }
 0x1a5   : > { %v1177_v4 = vpop.f32.mrf.mxu1  ;;  %v1569_v5 = vpop.f32.mrf.mxu0  ;;  %v1578_v9 = vadd.f32 %v2783_v1, %v3605_v40 }
 0x1a6   : > { %2554 = vst [vmem:[%s3654_s5 + $0x40] sm:$0xff] %v2415_v2   ;;  %2569 = vst [vmem:[%s3658_s19 + $0x40] sm:$0xff] %v2495_v3   ;;  %v1178_v12 = vadd.f32 %v3600_v26, %v1177_v4  ;;  %v1570_v13 = vadd.f32 %v3605_v40, %v1569_v5 }
 0x1a7   : > { %v2736_v6 = vpop.f32.mrf.mxu1  ;;  %v2784_v7 = vpop.f32.mrf.mxu0 }
 0x1a8   : > { %v1189_v10 = vadd.f32 %v2736_v6, %v3600_v26  ;;  %v1581_v11 = vadd.f32 %v2784_v7, %v3605_v40 }
 0x1a9   : > { %v1180_v14 = vpop.f32.mrf.mxu1  ;;  %v1572_v15 = vpop.f32.mrf.mxu0 }
 0x1aa   : > { %v2430_v16 = vpack.c.bf16 %v1189_v10, %v1186_v8  ;;  %v2510_v17 = vpack.c.bf16 %v1581_v11, %v1578_v9  ;;  %v1181_v18 = vadd.f32 %v3600_v26, %v1180_v14  ;;  %v1573_v19 = vadd.f32 %v3605_v40, %v1572_v15 }
 0x1ab   : > { %v2739_v20 = vpop.f32.mrf.mxu1  ;;  %v2787_v21 = vpop.f32.mrf.mxu0 }
 0x1ac   : > { %2557 = vst [vmem:[%s3654_s5 + $0x58] sm:$0xff] %v2430_v16   ;;  %2572 = vst [vmem:[%s3658_s19 + $0x58] sm:$0xff] %v2510_v17   ;;  %v2425_v22 = vpack.c.bf16 %v1181_v18, %v1178_v12  ;;  %v2505_v23 = vpack.c.bf16 %v1573_v19, %v1570_v13  ;;  %v1202_v29 = vadd.f32 %v2739_v20, %v3600_v26 }
 0x1ad   : > { %v1193_v24 = vpop.f32.mrf.mxu1  ;;  %v1585_v25 = vpop.f32.mrf.mxu0  ;;  %v1594_v30 = vadd.f32 %v2787_v21, %v3605_v40 }
 0x1ae   : > { %2556 = vst [vmem:[%s3654_s5 + $0x50] sm:$0xff] %v2425_v22   ;;  %2571 = vst [vmem:[%s3658_s19 + $0x50] sm:$0xff] %v2505_v23   ;;  %v1194_v33 = vadd.f32 %v3600_v26, %v1193_v24  ;;  %v1586_v34 = vadd.f32 %v3605_v40, %v1585_v25 }
 0x1af   : > { %v2740_v27 = vpop.f32.mrf.mxu1  ;;  %v2788_v28 = vpop.f32.mrf.mxu0 }
 0x1b0   : > { %v1205_v31 = vadd.f32 %v2740_v27, %v3600_v26  ;;  %v1597_v32 = vadd.f32 %v2788_v28, %v3605_v40 }
 0x1b1   : > { %v1196_v35 = vpop.f32.mrf.mxu1  ;;  %v1588_v36 = vpop.f32.mrf.mxu0 }
 0x1b2   : > { %v2440_v37 = vpack.c.bf16 %v1205_v31, %v1202_v29  ;;  %v2520_v38 = vpack.c.bf16 %v1597_v32, %v1594_v30  ;;  %v1197_v39 = vadd.f32 %v3600_v26, %v1196_v35  ;;  %v1589_v41 = vadd.f32 %v3605_v40, %v1588_v36 }
 0x1b3   : > { %v2743_v42 = vpop.f32.mrf.mxu1  ;;  %v2791_v43 = vpop.f32.mrf.mxu0 }
 0x1b4   : > { %2559 = vst [vmem:[%s3654_s5 + $0x68] sm:$0xff] %v2440_v37   ;;  %2574 = vst [vmem:[%s3658_s19 + $0x68] sm:$0xff] %v2520_v38   ;;  %v2435_v44 = vpack.c.bf16 %v1197_v39, %v1194_v33  ;;  %v2515_v45 = vpack.c.bf16 %v1589_v41, %v1586_v34  ;;  %v1218_v50 = vadd.f32 %v2743_v42, %v3600_v26 }
 0x1b5   : > { %v1209_v46 = vpop.f32.mrf.mxu1  ;;  %v1601_v47 = vpop.f32.mrf.mxu0  ;;  %v1610_v51 = vadd.f32 %v2791_v43, %v3605_v40 }
 0x1b6   : > { %2558 = vst [vmem:[%s3654_s5 + $0x60] sm:$0xff] %v2435_v44   ;;  %2573 = vst [vmem:[%s3658_s19 + $0x60] sm:$0xff] %v2515_v45   ;;  %v1210_v54 = vadd.f32 %v3600_v26, %v1209_v46  ;;  %v1602_v55 = vadd.f32 %v3605_v40, %v1601_v47 }
 0x1b7   : > { %v2744_v48 = vpop.f32.mrf.mxu1  ;;  %v2792_v49 = vpop.f32.mrf.mxu0 }
 0x1b8   : > { %v1221_v52 = vadd.f32 %v2744_v48, %v3600_v26  ;;  %v1613_v53 = vadd.f32 %v2792_v49, %v3605_v40 }
 0x1b9   : > { %v1212_v56 = vpop.f32.mrf.mxu1  ;;  %v1604_v57 = vpop.f32.mrf.mxu0 }
 0x1ba   : > { %v2450_v58 = vpack.c.bf16 %v1221_v52, %v1218_v50  ;;  %v2530_v59 = vpack.c.bf16 %v1613_v53, %v1610_v51  ;;  %v1213_v60 = vadd.f32 %v3600_v26, %v1212_v56  ;;  %v1605_v61 = vadd.f32 %v3605_v40, %v1604_v57 }
 0x1bc   : > { %2561 = vst [vmem:[%s3654_s5 + $0x78] sm:$0xff] %v2450_v58   ;;  %2576 = vst [vmem:[%s3658_s19 + $0x78] sm:$0xff] %v2530_v59   ;;  %v2445_v62 = vpack.c.bf16 %v1213_v60, %v1210_v54  ;;  %v2525_v63 = vpack.c.bf16 %v1605_v61, %v1602_v55 }
 0x1be   : > { %2560 = vst [vmem:[%s3654_s5 + $0x70] sm:$0xff] %v2445_v62   ;;  %2575 = vst [vmem:[%s3658_s19 + $0x70] sm:$0xff] %v2525_v63  }
 0x1bf   : > { %3117 = shalt.err (!%p3114_p3)
}
 0x1c0   : > { %s3118_s12 = scalar_lea.hbm %s3752_s21, 2048  ;;  %s3122_s14 = scalar_lea.hbm %s3898_s18, 8192 }
 0x1c1   : > { %p3119_p8 = scmp.ne.s32.totalorder %s3752_s21, %s3118_s12  ;;  %p3123_p4 = scmp.lt.s32.totalorder %s3752_s21, %s3898_s18 }
 0x1c2   : > { %p3124_p7 = scmp.lt.s32.totalorder %s3122_s14, %s3118_s12 }
 0x1c3   : > { %p3120_p2 = pnand %p3119_p8, %p3423_p13 }
 0x1c4   : > { %p3125_p1 = por %p3124_p7, %p3123_p4 }
 0x1c5   : > { %p3121_p5 = pneg %p3120_p2 }
 0x1c7   : > { %p3126_p11 = pnand %p3125_p1, %p3121_p5 }
 0x1c9   : > { %3129 = shalt.err (!%p3126_p11)
}
 0x1ca   : > { %2824 = dma.vmem_to_hbm [thread:$0]  (%p3423_p13), %s3754_s26, 2048, %s3752_s21, %s3766_s22, %s3247_s9, %s3247_s9, %s3248_s25  }
 0x1cb   : > { %s3130_s3 = scalar_lea.vmem %s3762_s13, 2048  ;;  %s3250_s1 = smov [#allocation13]  }
 0x1cc   : > { %p3131_p9 = scmp.ne.s32.totalorder %s3762_s13, %s3130_s3  ;;  %s3134_s17 = sshll.u32 %s3250_s1, 4  ;;  %s3135_s17 = int_to_ptr.vmem [resolvable:$false] %s3134_s17 }
 0x1cd   : > { %s3136_s8 = scalar_lea.vmem %s3135_s17, 4096  ;;  %p3137_p0 = scmp.lt.s32.totalorder %s3762_s13, %s3135_s17 }
 0x1ce   : > { %p3132_p12 = pnand %p3131_p9, %p3423_p13  ;;  %p3138_p3 = scmp.lt.s32.totalorder %s3136_s8, %s3130_s3 }
 0x1d0   : > { %p3133_p10 = pneg %p3132_p12  ;;  %p3139_p8 = por %p3138_p3, %p3137_p0 }
 0x1d2   : > { %p3140_p2 = pnand %p3139_p8, %p3133_p10 }
 0x1d4   : > { %3143 = shalt.err (!%p3140_p2)
}
 0x1d5   : > { %s3144_s12 = scalar_lea.hbm %s3760_s27, 2048  ;;  %s3148_s5 = scalar_lea.hbm %s3899_s20, 8192 }
 0x1d6   : > { %p3145_p5 = scmp.ne.s32.totalorder %s3760_s27, %s3144_s12  ;;  %p3149_p1 = scmp.lt.s32.totalorder %s3760_s27, %s3899_s20 }
 0x1d7   : > { %p3150_p11 = scmp.lt.s32.totalorder %s3148_s5, %s3144_s12 }
 0x1d8   : > { %p3146_p4 = pnand %p3145_p5, %p3423_p13 }
 0x1d9   : > { %p3151_p9 = por %p3150_p11, %p3149_p1 }
 0x1da   : > { %p3147_p7 = pneg %p3146_p4 }
 0x1dc   : > { %p3152_p12 = pnand %p3151_p9, %p3147_p7 }
 0x1de   : > { %3155 = shalt.err (!%p3152_p12)
}
 0x1df   : > { %2825 = dma.vmem_to_hbm [thread:$0]  (%p3423_p13), %s3762_s13, 2048, %s3760_s27, %s3766_s22, %s3247_s9, %s3247_s9, %s3248_s25  }
 0x1e0 PF: > { %s3900_s29 = sld [smem:[#allocation19_spill]]  ;;  %p2860_p10 = scmp.ge.s32.totalorder %s3238_s16, 2 }
 0x1e2   : > { %p2844_p0 = pnand %p2860_p10, %p3358_p6 }
 0x1e4   : > { %p2845_p3 = pneg %p2844_p0 }
 0x1e6   : > { %s1853_s3 = sand.u32 1, %s3900_s29  }
 0x1e7   : > { %s1854_s1 = scalar_lea.sflag [#allocation4], %s1853_s3 }
 0x1e8   : > { %3201 = dma.done.wait (%p2845_p3), %s1854_s1, 2048  }
 0x1e9   : > { %3203 = vsyncadd (%p2845_p3), %s1854_s1, 4294965248  ;;  %s3902_s28 = sadd.s32 4294967294, %s3238_s16  }
 0x1ea   : > { %s1862_s17 = sand.u32 1, %s3902_s28  }
 0x1eb   : > { %s1863_s8 = scalar_lea.sflag [#allocation12], %s1862_s17 }
 0x1ec   : > { %3205 = dma.done.wait (%p2845_p3), %s1863_s8, 4096  }
 0x1ed   : > { %3207 = vsyncadd (%p2845_p3), %s1863_s8, 4294963200  ;;  %s31_s16 = sadd.s32 1, %s3238_s16   ;;  %s3903_s12 = sld [smem:[#allocation20_spill]] }
 0x1ee   : > { %p28_p13 = scmp.ge.s32.totalorder %s31_s16, 6   ;;  %s3904_s14 = sld [smem:[#allocation22_spill]] }
 0x1ef   : > { %s3905_s30 = smov %s3214_s10  ;;  %s3906_s10 = smov %s3218_s11 }
 0x1f0   : > { %s3907_s11 = smov %s3440_s23  ;;  %s3908_s13 = smov %s3234_s15 }
 0x1f1   : > { %s3909_s15 = smov %s3915_s24  ;;  %30 = sbr.rel (!%p28_p13) target bundleno = 18 (0x12), region = 137 }
 0x1f6   :  { %1877 = vsyncpa [#allocation3], 1 }
 0x1f7   :  { %1879 = vsyncpa [#allocation3 + $0x1], 1 }
 0x1f8   :  { %1880 = vsyncpa [#allocation6], 1 }
 0x1f9   :  { %1881 = vsyncpa [#allocation9], 1 }
 0x1fa   :  { %1882 = vsyncpa [#allocation4], 1 }
 0x1fb   :  { %1884 = vsyncpa [#allocation4 + $0x1], 1 }
 0x1fc   :  { %1885 = vsyncpa [#allocation12], 1 }
 0x1fd   :  { %1887 = vsyncpa [#allocation12 + $0x1], 1 }

</bundles_post_ra>
